<compile_context>
chip_gen: v6e
topology: v6e:2x2x1
jax: 0.10.0
libtpu: 0.0.40
codegen_flags: <defaults>
</compile_context>

<pallas_src>
import functools

import jax
import jax.numpy as jnp
from jax.experimental import pallas as pl
from jax.experimental.pallas import tpu as pltpu

LN_EPS = 1e-12


def latent_decoder_kernel(x_ref, w1_ref, b1_ref, w2_ref, b2_ref,
                          gamma_ref, beta_ref, o_ref):
    # (TN, H) input tile; matmul operands in bf16, accumulation in f32 (MXU).
    x = x_ref[...].astype(jnp.bfloat16)

    # dense: x @ W1 + b1   (W1 pre-transposed to (H_in, H_out) in the wrapper)
    h = jnp.dot(x, w1_ref[...], preferred_element_type=jnp.float32)
    h = h + b1_ref[...]                                        # (TN, H) f32

    # dense_mu: h @ W2 + b2
    h2 = jnp.dot(h.astype(jnp.bfloat16), w2_ref[...],
                 preferred_element_type=jnp.float32)
    h2 = h2 + b2_ref[...]                                      # (TN, H) f32

    # LayerNorm over the hidden axis (population variance, eps inside rsqrt),
    # fully in f32, fused with the matmuls.
    mean = jnp.mean(h2, axis=-1, keepdims=True)                # (TN, 1)
    cent = h2 - mean
    var = jnp.mean(cent * cent, axis=-1, keepdims=True)        # (TN, 1)
    y = cent * jax.lax.rsqrt(var + LN_EPS) * gamma_ref[...] + beta_ref[...]

    # Tanh activation (EUP); store in the caller's dtype.
    o_ref[...] = jnp.tanh(y).astype(o_ref.dtype)


@functools.lru_cache(maxsize=1)
def _vmem_limit_bytes():
    """Generation-aware VMEM limit: ~80% of physical VMEM, 64 MiB fallback."""
    cap = 64 * 1024 * 1024
    try:
        cap = int(pltpu.get_tpu_info().vmem_capacity_bytes)
    except Exception:
        pass
    return int(cap * 0.8)


def _round_up(n, m):
    return ((n + m - 1) // m) * m


def _choose_row_tile(n_rows, h, x_bytes, out_bytes, vmem_limit):
    """Pick the token-row tile TN from the VMEM left after resident weights."""
    # Resident, single-buffered operands: two (H, H) bf16 weights + 4 f32 (1,H)
    # vectors (biases + LN params).
    resident = 2 * h * h * 2 + 4 * h * 4
    budget = int(vmem_limit * 0.9)          # accounting headroom under the cap
    if resident > budget:
        # TODO(synk): add a tiled-K fallback (second grid axis over the hidden
        # dim with an f32 VMEM accumulator, reduction axis last / "arbitrary")
        # for H large enough that both (H, H) weights no longer fit in VMEM
        # (H >~ 4096 on v7x).
        raise NotImplementedError(
            f"hidden_size={h}: resident weights ({resident} B) exceed the VMEM "
            f"budget ({budget} B); tiled-K fallback not implemented.")
    avail = budget - resident
    per_row = 2 * h * (x_bytes + out_bytes)   # double-buffered x + out tiles
    n8 = _round_up(max(n_rows, 1), 8)

    # Small hidden sizes are store/overhead-bound: collapse to a single grid
    # step when the whole (padded) token slab fits in VMEM.
    if h < 128 and n8 * per_row <= avail:
        return n8

    for tn in (1024, 512, 256, 128, 64, 32, 16, 8):
        if tn * per_row <= avail:
            return min(tn, n8)
    return 8


@jax.jit
def latent_decoder_forward(hidden_states, w1, b1, w2, b2, gamma, beta):
    """hidden_states: (..., H); w1/w2: (H, H) in PyTorch (out, in) layout;
    b1/b2/gamma/beta: (H,)."""
    orig_shape = hidden_states.shape
    H = orig_shape[-1]
    out_dtype = hidden_states.dtype
    x = hidden_states.reshape(-1, H)                 # keep caller dtype
    N = x.shape[0]

    vmem_limit = _vmem_limit_bytes()
    TN = _choose_row_tile(N, H,
                          x_bytes=x.dtype.itemsize,
                          out_bytes=jnp.dtype(out_dtype).itemsize,
                          vmem_limit=vmem_limit)
    N_pad = _round_up(N, TN)
    if N_pad != N:
        x = jnp.pad(x, ((0, N_pad - N), (0, 0)))     # padded rows sliced off below
    grid = (N_pad // TN,)

    # One-time layout/dtype prep (amortized over the whole token sweep):
    # weights pre-transposed to (in, out) and cast to bf16 for the MXU;
    # biases / LayerNorm params stay f32.
    w1t = w1.T.astype(jnp.bfloat16)
    w2t = w2.T.astype(jnp.bfloat16)
    b1_2 = b1.reshape(1, H).astype(jnp.float32)
    b2_2 = b2.reshape(1, H).astype(jnp.float32)
    g_2 = gamma.reshape(1, H).astype(jnp.float32)
    be_2 = beta.reshape(1, H).astype(jnp.float32)

    resident = pl.Buffered(1)   # constant index_map -> no double-buffering

    out = pl.pallas_call(
        latent_decoder_kernel,
        out_shape=jax.ShapeDtypeStruct((N_pad, H), out_dtype),
        grid_spec=pltpu.PrefetchScalarGridSpec(
            num_scalar_prefetch=0,
            grid=grid,
            in_specs=[
                pl.BlockSpec((TN, H), lambda i: (i, 0)),                         # x tile (pipelined)
                pl.BlockSpec((H, H), lambda i: (0, 0), pipeline_mode=resident),  # W_dense^T
                pl.BlockSpec((1, H), lambda i: (0, 0), pipeline_mode=resident),  # b_dense
                pl.BlockSpec((H, H), lambda i: (0, 0), pipeline_mode=resident),  # W_dense_mu^T
                pl.BlockSpec((1, H), lambda i: (0, 0), pipeline_mode=resident),  # b_dense_mu
                pl.BlockSpec((1, H), lambda i: (0, 0), pipeline_mode=resident),  # LN gamma
                pl.BlockSpec((1, H), lambda i: (0, 0), pipeline_mode=resident),  # LN beta
            ],
            out_specs=pl.BlockSpec((TN, H), lambda i: (i, 0)),
        ),
        compiler_params=pltpu.CompilerParams(
            dimension_semantics=("parallel",),        # token axis shards across TCs
            vmem_limit_bytes=vmem_limit,
        ),
    )(x, w1t, b1_2, w2t, b2_2, g_2, be_2)

    return out[:N].reshape(orig_shape)


if __name__ == "__main__":
    # Small shapes consistent with the module: hidden_size=32, batch=2, seq=12
    # -> 24 flattened token rows, single grid step (TN = 24).
    B, S, H = 2, 12, 32

    key = jax.random.PRNGKey(0)
    kx, kw1, kb1, kw2, kb2, kg, kbt = jax.random.split(key, 7)

    hidden_states = jax.random.normal(kx, (B, S, H), dtype=jnp.float32)

    # Deterministic nn.Linear-style init (uniform +- 1/sqrt(H)).
    bound = 1.0 / (H ** 0.5)
    w1 = jax.random.uniform(kw1, (H, H), minval=-bound, maxval=bound, dtype=jnp.float32)
    b1 = jax.random.uniform(kb1, (H,), minval=-bound, maxval=bound, dtype=jnp.float32)
    w2 = jax.random.uniform(kw2, (H, H), minval=-bound, maxval=bound, dtype=jnp.float32)
    b2 = jax.random.uniform(kb2, (H,), minval=-bound, maxval=bound, dtype=jnp.float32)
    # LayerNorm affine params (perturbed from default 1/0 to exercise the path).
    gamma = 1.0 + 0.1 * jax.random.normal(kg, (H,), dtype=jnp.float32)
    beta = 0.1 * jax.random.normal(kbt, (H,), dtype=jnp.float32)

    out = latent_decoder_forward(hidden_states, w1, b1, w2, b2, gamma, beta)
    jax.block_until_ready(out)

    # Pure-JAX f32 reference (kernel matmuls run in bf16 -> relaxed tolerance).
    xf = hidden_states.reshape(-1, H)
    ref_h = xf @ w1.T + b1
    ref_h2 = ref_h @ w2.T + b2
    mean = jnp.mean(ref_h2, axis=-1, keepdims=True)
    var = jnp.mean((ref_h2 - mean) ** 2, axis=-1, keepdims=True)
    ref = jnp.tanh((ref_h2 - mean) / jnp.sqrt(var + LN_EPS) * gamma + beta)
    ref = ref.reshape(B, S, H)

    assert out.shape == (B, S, H)
    assert out.dtype == hidden_states.dtype
    max_err = float(jnp.max(jnp.abs(out - ref)))
    assert jnp.allclose(out, ref, atol=3e-2, rtol=3e-2), f"max |err| = {max_err}"

    print("KERNEL_OK")
</pallas_src>

<mosaic_0001>
module attributes {stable_mosaic.version = 11 : i64} {
  func.func @latent_decoder_kernel(%arg0: i32, %arg1: memref<24x32xf32, #tpu.memory_space<vmem>>, %arg2: memref<32x32xbf16, #tpu.memory_space<vmem>>, %arg3: memref<1x32xf32, #tpu.memory_space<vmem>>, %arg4: memref<32x32xbf16, #tpu.memory_space<vmem>>, %arg5: memref<1x32xf32, #tpu.memory_space<vmem>>, %arg6: memref<1x32xf32, #tpu.memory_space<vmem>>, %arg7: memref<1x32xf32, #tpu.memory_space<vmem>>, %arg8: memref<24x32xf32, #tpu.memory_space<vmem>>) attributes {dimension_semantics = [#tpu.dimension_semantics<parallel>], iteration_bounds = array<i64: 1>, scalar_prefetch = 0 : i64, scratch_operands = 0 : i64, tpu.core_type = #tpu.core_type<tc>, window_params = [{transform_indices = @transform_0, window_bounds = array<i64: 24, 32>}, {pipeline_mode = #tpu.pipeline_mode<synchronous>, transform_indices = @transform_1, window_bounds = array<i64: 32, 32>}, {pipeline_mode = #tpu.pipeline_mode<synchronous>, transform_indices = @transform_2, window_bounds = array<i64: 1, 32>}, {pipeline_mode = #tpu.pipeline_mode<synchronous>, transform_indices = @transform_3, window_bounds = array<i64: 32, 32>}, {pipeline_mode = #tpu.pipeline_mode<synchronous>, transform_indices = @transform_4, window_bounds = array<i64: 1, 32>}, {pipeline_mode = #tpu.pipeline_mode<synchronous>, transform_indices = @transform_5, window_bounds = array<i64: 1, 32>}, {pipeline_mode = #tpu.pipeline_mode<synchronous>, transform_indices = @transform_6, window_bounds = array<i64: 1, 32>}, {transform_indices = @transform_7, window_bounds = array<i64: 24, 32>}]} {
    %c0 = arith.constant 0 : index
    %c0_0 = arith.constant 0 : index
    %0 = vector.load %arg1[%c0, %c0_0] : memref<24x32xf32, #tpu.memory_space<vmem>>, vector<24x32xf32>
    %1 = arith.truncf %0 : vector<24x32xf32> to vector<24x32xbf16>
    %c0_1 = arith.constant 0 : index
    %c0_2 = arith.constant 0 : index
    %2 = vector.load %arg2[%c0_1, %c0_2] : memref<32x32xbf16, #tpu.memory_space<vmem>>, vector<32x32xbf16>
    %cst = arith.constant dense<0.000000e+00> : vector<24x32xf32>
    %3 = tpu.matmul %1, %2, %cst {dimension_numbers = #tpu.dot_dimension_numbers<[1], [0], [0], [1], [0, 0, 1, 1], [], []>} : vector<24x32xbf16>, vector<32x32xbf16>, vector<24x32xf32> -> vector<24x32xf32>
    %c0_3 = arith.constant 0 : index
    %c0_4 = arith.constant 0 : index
    %4 = vector.load %arg3[%c0_3, %c0_4] : memref<1x32xf32, #tpu.memory_space<vmem>>, vector<1x32xf32>
    %5 = vector.broadcast %4 : vector<1x32xf32> to vector<24x32xf32>
    %6 = arith.addf %3, %5 : vector<24x32xf32>
    %7 = arith.truncf %6 : vector<24x32xf32> to vector<24x32xbf16>
    %c0_5 = arith.constant 0 : index
    %c0_6 = arith.constant 0 : index
    %8 = vector.load %arg4[%c0_5, %c0_6] : memref<32x32xbf16, #tpu.memory_space<vmem>>, vector<32x32xbf16>
    %cst_7 = arith.constant dense<0.000000e+00> : vector<24x32xf32>
    %9 = tpu.matmul %7, %8, %cst_7 {dimension_numbers = #tpu.dot_dimension_numbers<[1], [0], [0], [1], [0, 0, 1, 1], [], []>} : vector<24x32xbf16>, vector<32x32xbf16>, vector<24x32xf32> -> vector<24x32xf32>
    %c0_8 = arith.constant 0 : index
    %c0_9 = arith.constant 0 : index
    %10 = vector.load %arg5[%c0_8, %c0_9] : memref<1x32xf32, #tpu.memory_space<vmem>>, vector<1x32xf32>
    %11 = vector.broadcast %10 : vector<1x32xf32> to vector<24x32xf32>
    %12 = arith.addf %9, %11 : vector<24x32xf32>
    %cst_10 = arith.constant dense<0.000000e+00> : vector<24xf32>
    %13 = vector.multi_reduction <add>, %12, %cst_10 [1] : vector<24x32xf32> to vector<24xf32>
    %14 = vector.shape_cast %13 : vector<24xf32> to vector<24x1xf32>
    %cst_11 = arith.constant 3.200000e+01 : f32
    %15 = vector.broadcast %cst_11 : f32 to vector<24x1xf32>
    %16 = arith.divf %14, %15 : vector<24x1xf32>
    %17 = vector.broadcast %16 : vector<24x1xf32> to vector<24x32xf32>
    %18 = arith.subf %12, %17 : vector<24x32xf32>
    %19 = arith.mulf %18, %18 : vector<24x32xf32>
    %cst_12 = arith.constant dense<0.000000e+00> : vector<24xf32>
    %20 = vector.multi_reduction <add>, %19, %cst_12 [1] : vector<24x32xf32> to vector<24xf32>
    %21 = vector.shape_cast %20 : vector<24xf32> to vector<24x1xf32>
    %cst_13 = arith.constant 3.200000e+01 : f32
    %22 = vector.broadcast %cst_13 : f32 to vector<24x1xf32>
    %23 = arith.divf %21, %22 : vector<24x1xf32>
    %cst_14 = arith.constant 9.99999996E-13 : f32
    %24 = vector.broadcast %cst_14 : f32 to vector<24x1xf32>
    %25 = arith.addf %23, %24 : vector<24x1xf32>
    %26 = math.rsqrt %25 : vector<24x1xf32>
    %27 = vector.broadcast %26 : vector<24x1xf32> to vector<24x32xf32>
    %28 = arith.mulf %18, %27 : vector<24x32xf32>
    %c0_15 = arith.constant 0 : index
    %c0_16 = arith.constant 0 : index
    %29 = vector.load %arg6[%c0_15, %c0_16] : memref<1x32xf32, #tpu.memory_space<vmem>>, vector<1x32xf32>
    %30 = vector.broadcast %29 : vector<1x32xf32> to vector<24x32xf32>
    %31 = arith.mulf %28, %30 : vector<24x32xf32>
    %c0_17 = arith.constant 0 : index
    %c0_18 = arith.constant 0 : index
    %32 = vector.load %arg7[%c0_17, %c0_18] : memref<1x32xf32, #tpu.memory_space<vmem>>, vector<1x32xf32>
    %33 = vector.broadcast %32 : vector<1x32xf32> to vector<24x32xf32>
    %34 = arith.addf %31, %33 : vector<24x32xf32>
    %35 = math.tanh %34 : vector<24x32xf32>
    %c0_19 = arith.constant 0 : index
    %c0_20 = arith.constant 0 : index
    %36 = vector.load %arg8[%c0_19, %c0_20] : memref<24x32xf32, #tpu.memory_space<vmem>>, vector<24x32xf32>
    tpu.vector_store %arg8[%c0_19, %c0_20], %35 {strides = array<i32>} : memref<24x32xf32, #tpu.memory_space<vmem>>, vector<24x32xf32>,
    return
  }
  func.func @transform_0(%arg0: i32) -> (i32, i32) {
    %c0_i32 = arith.constant 0 : i32
    %c0_i32_0 = arith.constant 0 : i32
    return %arg0, %c0_i32 : i32, i32
  }
  func.func @transform_1(%arg0: i32) -> (i32, i32) {
    %c0_i32 = arith.constant 0 : i32
    %c0_i32_0 = arith.constant 0 : i32
    %c0_i32_1 = arith.constant 0 : i32
    return %c0_i32, %c0_i32_0 : i32, i32
  }
  func.func @transform_2(%arg0: i32) -> (i32, i32) {
    %c0_i32 = arith.constant 0 : i32
    %c0_i32_0 = arith.constant 0 : i32
    %c0_i32_1 = arith.constant 0 : i32
    return %c0_i32, %c0_i32_0 : i32, i32
  }
  func.func @transform_3(%arg0: i32) -> (i32, i32) {
    %c0_i32 = arith.constant 0 : i32
    %c0_i32_0 = arith.constant 0 : i32
    %c0_i32_1 = arith.constant 0 : i32
    return %c0_i32, %c0_i32_0 : i32, i32
  }
  func.func @transform_4(%arg0: i32) -> (i32, i32) {
    %c0_i32 = arith.constant 0 : i32
    %c0_i32_0 = arith.constant 0 : i32
    %c0_i32_1 = arith.constant 0 : i32
    return %c0_i32, %c0_i32_0 : i32, i32
  }
  func.func @transform_5(%arg0: i32) -> (i32, i32) {
    %c0_i32 = arith.constant 0 : i32
    %c0_i32_0 = arith.constant 0 : i32
    %c0_i32_1 = arith.constant 0 : i32
    return %c0_i32, %c0_i32_0 : i32, i32
  }
  func.func @transform_6(%arg0: i32) -> (i32, i32) {
    %c0_i32 = arith.constant 0 : i32
    %c0_i32_0 = arith.constant 0 : i32
    %c0_i32_1 = arith.constant 0 : i32
    return %c0_i32, %c0_i32_0 : i32, i32
  }
  func.func @transform_7(%arg0: i32) -> (i32, i32) {
    %c0_i32 = arith.constant 0 : i32
    %c0_i32_0 = arith.constant 0 : i32
    return %arg0, %c0_i32 : i32, i32
  }
}

</mosaic_0001>

<bundles_post_ra>
// kernel: latent_decoder_forward.1
= control target key start
LH: loop header
LB: loop body
LE: loop exit
PB: predicated region body
PF: predicated region fallthrough
CT: control target
= control target key end

     0   :  { %vm55_vm0 = vcmask 261120   ;;  %s406_s1 = inlined_call_operand.vmem [shape: bf16[32,32], index: 1, kind: input, shape index: {}]   ;;  %s407_s0 = inlined_call_operand.vmem [shape: f32[24,32], index: 0, kind: input, shape index: {}]   ;;  %s408_s3 = inlined_call_operand.vmem [shape: bf16[32,32], index: 3, kind: input, shape index: {}]   ;;  %s409_s2 = inlined_call_operand.vmem [shape: f32[1,32], index: 2, kind: input, shape index: {}]   ;;  %s410_s4 = inlined_call_operand.vmem [shape: f32[1,32], index: 4, kind: input, shape index: {}]   ;;  %s411_s5 = inlined_call_operand.vmem [shape: f32[1,32], index: 5, kind: input, shape index: {}]   ;;  %s412_s6 = inlined_call_operand.vmem [shape: f32[1,32], index: 6, kind: input, shape index: {}]   ;;  %s413_s7 = inlined_call_operand.vmem [shape: f32[24,32], index: 7, kind: output, shape index: {}]  }
   0x1   :  { %v295_v0 = vld [vmem:[%s406_s1 + $0x8] sm:$0xff]   ;;  %v296_v1 = vld [vmem:[%s406_s1] sm:$0xff]   ;;  %v29_v4 = vld [vmem:[%s407_s0 + $0x10] sm:$0xff] }
   0x2   :  { %279 = vmatprep.subr.bf16.mxu0 %v295_v0  ;;  %v27_v2 = vld [vmem:[%s407_s0] sm:$0xff]  ;;  %v28_v3 = vld [vmem:[%s407_s0 + $0x8] sm:$0xff]  ;;  %v31_v6 = vpack.c.bf16 %v29_v4, %v29_v4 }
   0x3   :  { %280 = vmatpush3.bf16.msra.mxu0 %v295_v0  ;;  %v30_v5 = vpack.c.bf16 %v28_v3, %v27_v2  ;;  %v297_v7 = vld [vmem:[%s408_s3 + $0x8] sm:$0xff]   ;;  %v298_v8 = vld [vmem:[%s408_s3] sm:$0xff]  }
   0x4   :  { %281 = vmatprep.subr.bf16.mxu0 %v296_v1  ;;  %287 = vmatprep.subr.bf16.mxu1 %v297_v7  ;;  %v259_v11 = vld [vmem:[%s409_s2] ss:$0 sm:$0xff] }
   0x5   :  { %283 = vmatprep.mubr.msk.bf16.mxu0 %vm55_vm0, %v30_v5  ;;  %288 = vmatpush3.bf16.msra.mxu1 %v297_v7  ;;  %v264_v19 = vld [vmem:[%s410_s4] ss:$0 sm:$0xff] }
   0x6   :  { %289 = vmatprep.subr.bf16.mxu1 %v298_v8  ;;  %v269_v55 = vld [vmem:[%s411_s5] ss:$0 sm:$0xff] }
   0x7   :  { %282 = vmatpush3.bf16.msra.mxu0 %v296_v1  ;;  %v270_v57 = vld [vmem:[%s412_s6] ss:$0 sm:$0xff] }
   0x9   :  { %290 = vmatpush3.bf16.msra.mxu1 %v298_v8 }
   0xa   :  { %284 = vmatmul.mubr.msk.bf16.vlgmr.msra.gmra.mxu0 %vm55_vm0, %v31_v6 }
  0xca   :  { %v285_v9 = vpop.f32.mrf.mxu0 }
  0xcb   :  { %v105_v13 = vadd.f32 %v285_v9, %v259_v11 }
  0xcc   :  { %v96_v10 = vpop.f32.mrf.mxu0 }
  0xcd   :  { %v97_v15 = vadd.f32 %v259_v11, %v96_v10  ;;  %v111_v18 = vpack.c.bf16 %v105_v13, %v105_v13 }
  0xce   :  { %v286_v12 = vpop.f32.mrf.mxu0 }
  0xd0   :  { %v99_v14 = vpop.f32.mrf.mxu0 }
  0xd1   :  { %v100_v16 = vadd.f32 %v259_v11, %v99_v14 }
  0xd3   :  { %v110_v17 = vpack.c.bf16 %v100_v16, %v97_v15 }
  0xd5   :  { %291 = vmatprep.mubr.msk.bf16.mxu1 %vm55_vm0, %v110_v17 }
  0xd6   :  { %292 = vmatmul.mubr.msk.bf16.vlgmr.msra.gmra.mxu1 %vm55_vm0, %v111_v18 }
 0x196   :  { %v293_v20 = vpop.f32.mrf.mxu1 }
 0x197   :  { %v184_v21 = vadd.f32 %v293_v20, %v264_v19 }
 0x198   :  { %v175_v22 = vpop.f32.mrf.mxu1 }
 0x199   :  { %v176_v23 = vadd.f32 %v264_v19, %v175_v22  ;;  %v195_v24 = vsel %vm55_vm0, %v184_v21, 0.0 }
 0x19a   :  { %196 = vadd.xlane.f32.xlu1 %v195_v24  ;;  %v294_v25 = vpop.f32.mrf.mxu1 }
 0x19b   :  { %v189_v26 = vsel %vm55_vm0, %v176_v23, 0.0 }
 0x19c   :  { %v178_v27 = vpop.f32.mrf.mxu1  ;;  %190 = vadd.xlane.f32.xlu0 %v189_v26 }
 0x19d   :  { %v179_v28 = vadd.f32 %v264_v19, %v178_v27 }
 0x19f   :  { %v192_v29 = vsel %vm55_vm0, %v179_v28, 0.0 }
 0x1a0   :  { %193 = vadd.xlane.f32.xlu0 %v192_v29 }
 0x223   :  { %v197_v30 = vpop.xlane.xlu1 %196 }
 0x224   :  { %v201_v31 = vmul.f32 0.03125, %v197_v30 }
 0x225   :  { %v191_v32 = vpop.xlane.xlu0 %190 }
 0x226   :  { %v199_v33 = vmul.f32 0.03125, %v191_v32  ;;  %v204_v34 = vsub.f32 %v184_v21, %v201_v31 }
 0x228   :  { %v202_v35 = vsub.f32 %v176_v23, %v199_v33  ;;  %v207_v41 = vmul.f32 %v204_v34, %v204_v34 }
 0x229   :  { %v194_v36 = vpop.xlane.xlu0 %193 }
 0x22a   :  { %v200_v37 = vmul.f32 0.03125, %v194_v36  ;;  %v205_v38 = vmul.f32 %v202_v35, %v202_v35  ;;  %v214_v43 = vsel %vm55_vm0, %v207_v41, 0.0 }
 0x22c   :  { %v203_v39 = vsub.f32 %v179_v28, %v200_v37  ;;  %v208_v40 = vsel %vm55_vm0, %v205_v38, 0.0 }
 0x22d   :  { %209 = vadd.xlane.f32.xlu1 %v208_v40 }
 0x22e   :  { %v206_v42 = vmul.f32 %v203_v39, %v203_v39 }
 0x230   :  { %v211_v44 = vsel %vm55_vm0, %v206_v42, 0.0 }
 0x231   :  { %215 = vadd.xlane.f32.xlu1 %v214_v43  ;;  %212 = vadd.xlane.f32.xlu0 %v211_v44 }
 0x2b6   :  { %v210_v45 = vpop.xlane.xlu1 %209 }
 0x2b7   :  { %v217_v46 = vmul.f32 0.03125, %v210_v45 }
 0x2b9   :  { %v220_v47 = vadd.f32 1e-12, %v217_v46 }
 0x2ba   :  { %v216_v48 = vpop.xlane.xlu1 %215  ;;  %v213_v49 = vpop.xlane.xlu0 %212 }
 0x2bb   :  { %299 = vrsqrt.f32 %v220_v47  ;;  %v219_v50 = vmul.f32 0.03125, %v216_v48  ;;  %v218_v51 = vmul.f32 0.03125, %v213_v49 }
 0x2bd   :  { %v222_v52 = vadd.f32 1e-12, %v219_v50  ;;  %v221_v53 = vadd.f32 1e-12, %v218_v51 }
 0x2bf   :  { %301 = vrsqrt.f32 %v222_v52 }
 0x2c0   :  { %303 = vrsqrt.f32 %v221_v53 }
 0x2c8   :  { %v300_v54 = vpop.eup %299 }
 0x2c9   :  { %v226_v56 = vmul.f32 %v300_v54, %v202_v35 }
 0x2cb   :  { %v236_v58 = vmul.f32 %v269_v55, %v226_v56 }
 0x2cc   :  { %v302_v59 = vpop.eup %301 }
 0x2cd   :  { %v304_v60 = vpop.eup %303  ;;  %v246_v61 = vadd.f32 %v270_v57, %v236_v58  ;;  %v228_v62 = vmul.f32 %v302_v59, %v204_v34 }
 0x2ce   :  { %v227_v63 = vmul.f32 %v304_v60, %v203_v39 }
 0x2cf   :  { %305 = vtanh.f32 %v246_v61  ;;  %v238_v0 = vmul.f32 %v269_v55, %v228_v62 }
 0x2d0   :  { %v237_v1 = vmul.f32 %v269_v55, %v227_v63 }
 0x2d1   :  { %v248_v2 = vadd.f32 %v270_v57, %v238_v0 }
 0x2d2   :  { %v247_v3 = vadd.f32 %v270_v57, %v237_v1 }
 0x2d3   :  { %307 = vtanh.f32 %v248_v2 }
 0x2d4   :  { %309 = vtanh.f32 %v247_v3 }
 0x2dc   :  { %v306_v4 = vpop.eup %305 }
 0x2dd   :  { %252 = vst.msk [vmem:[%s413_s7] sm:$0xff] %vm55_vm0, %v306_v4 }
 0x2e0   :  { %v308_v5 = vpop.eup %307 }
 0x2e1   :  { %v310_v6 = vpop.eup %309  ;;  %254 = vst.msk [vmem:[%s413_s7 + $0x10] sm:$0xff] %vm55_vm0, %v308_v5 }
 0x2e2   :  { %253 = vst.msk [vmem:[%s413_s7 + $0x8] sm:$0xff] %vm55_vm0, %v310_v6 }

</bundles_post_ra>
